<compile_context>
chip_gen: v6e
topology: v6e:2x2x1
jax: 0.10.0
libtpu: 0.0.40
codegen_flags: <defaults>
</compile_context>

<pallas_src>
import functools
import math

import jax
import jax.numpy as jnp
from jax import lax
from jax.experimental import pallas as pl
from jax.experimental.pallas import tpu as pltpu

# --- deterministic "parameters" straight from the module's __init__ ----------
DARKEN_STRENGTH = 0.7
THIN_EDGES = True
GAUSSIAN = True

GRAY_W = (0.2989, 0.587, 0.114)
SOBEL_X = ((-1.0, 0.0, 1.0), (-2.0, 0.0, 2.0), (-1.0, 0.0, 1.0))
SOBEL_Y = ((-1.0, -2.0, -1.0), (0.0, 0.0, 0.0), (1.0, 2.0, 1.0))


def _gauss1d(ksize=3, sigma=1.0):
    # mirrors gaussianBlur(): x = arange(-ksize//2 + 1, ksize//2 + 1)
    start = -ksize // 2 + 1.0
    xs = [start + i for i in range(ksize)]
    ws = [math.exp(-(v * v) / (2.0 * sigma * sigma)) for v in xs]
    s = sum(ws)
    return tuple(w / s for w in ws)


GAUSS_1D = _gauss1d(3, 1.0)
GAUSS_K = tuple(tuple(a * b for b in GAUSS_1D) for a in GAUSS_1D)  # reference only


def _round_up(a, b):
    return (a + b - 1) // b * b


def _cdiv(a, b):
    return (a + b - 1) // b


# -----------------------------------------------------------------------------
# Pass 1: grayscale + separable Sobel magnitude + per-tile min/max partials.
# -----------------------------------------------------------------------------
def _edges_minmax_kernel(xc_ref, xu_ref, xd_ref, e_ref, tmin_ref, tmax_ref,
                         *, H, W, TH, Wp):
    i = pl.program_id(0)
    ETH = TH + 16  # current tile + 8-row halo blocks above and below

    col = lax.broadcasted_iota(jnp.int32, (1, Wp), 1)

    # +-1 column neighbours via XLU lane rotation; border fixed with iota mask.
    def left_nb(a, pv):   # value at column c-1 (pv at c == 0)
        return jnp.where(col == 0, pv, pltpu.roll(a, 1, axis=1))

    def right_nb(a, pv):  # value at column c+1 (pv where c+1 >= W)
        return jnp.where(col >= W - 1, pv, pltpu.roll(a, Wp - 1, axis=1))

    def gray(x):  # x: (3, R, Wp) -> (R, Wp)
        return GRAY_W[0] * x[0] + GRAY_W[1] * x[1] + GRAY_W[2] * x[2]

    # Extended grayscale band: global rows [i*TH - 8, i*TH + TH + 8).
    g = jnp.concatenate(
        [gray(xu_ref[...]), gray(xc_ref[...]), gray(xd_ref[...])], axis=0)

    # conv2d(padding=1) zero padding in the row direction (also neutralizes the
    # clamped halo blocks at the first/last tile and any H padding rows).
    rowg = lax.broadcasted_iota(jnp.int32, (ETH, 1), 0) + (i * TH - 8)
    g = jnp.where((rowg >= 0) & (rowg < H), g, 0.0)

    # Separable Sobel: X = [1,2,1]^T (x) [-1,0,1],  Y = [-1,0,1]^T (x) [1,2,1].
    gu = pltpu.roll(g, 1, axis=0)        # g[r-1]  (sublane roll, XLU)
    gd = pltpu.roll(g, ETH - 1, axis=0)  # g[r+1]
    vs = gu + 2.0 * g + gd
    vd = gd - gu
    ex = right_nb(vs, 0.0) - left_nb(vs, 0.0)
    ey = left_nb(vd, 0.0) + 2.0 * vd + right_nb(vd, 0.0)
    e_full = jnp.sqrt(ex * ex + ey * ey)

    # Interior rows only (aligned slice at sublane offset 8).
    e = e_full[8:8 + TH, :]
    e_ref[...] = e  # lane-dense (TH, Wp) store

    # Per-tile min/max partials over the valid image region only
    # (sublane reduce first, then one cross-lane reduce).
    rowc = lax.broadcasted_iota(jnp.int32, (TH, 1), 0) + i * TH
    valid = (rowc < H) & (col < W)
    emin = jnp.min(jnp.min(jnp.where(valid, e, jnp.inf), axis=0, keepdims=True))
    emax = jnp.max(jnp.max(jnp.where(valid, e, -jnp.inf), axis=0, keepdims=True))
    tmin_ref[...] = jnp.full(tmin_ref.shape, emin)
    tmax_ref[...] = jnp.full(tmax_ref.shape, emax)


# -----------------------------------------------------------------------------
# Pass 2: normalize + thin (3x3 min) + separable gaussian + darken + clamp.
# -----------------------------------------------------------------------------
def _darken_kernel(stats_ref, ec_ref, eu_ref, ed_ref, x_ref, o_ref,
                   *, H, W, TH, Wp):
    i = pl.program_id(0)
    ETH = TH + 16

    col = lax.broadcasted_iota(jnp.int32, (1, Wp), 1)

    def left_nb(a, pv):
        return jnp.where(col == 0, pv, pltpu.roll(a, 1, axis=1))

    def right_nb(a, pv):
        return jnp.where(col >= W - 1, pv, pltpu.roll(a, Wp - 1, axis=1))

    # Global min/max scalars from SMEM; normalization divide hoisted to a
    # single reciprocal per tile (approx=True would also be fine here).
    emin = stats_ref[0]
    emax = stats_ref[1]
    inv = pl.reciprocal(jnp.full((1, 1), emax - emin, jnp.float32), approx=False)

    # Extended raw-edges band: global rows [i*TH - 8, i*TH + TH + 8).
    e_ext = jnp.concatenate([eu_ref[...], ec_ref[...], ed_ref[...]], axis=0)
    rowg = lax.broadcasted_iota(jnp.int32, (ETH, 1), 0) + (i * TH - 8)
    inside = (rowg >= 0) & (rowg < H) & (col < W)

    # Normalized edges; +inf outside the image == -maxpool(-x) padding.
    en = jnp.where(inside, (e_ext - emin) * inv, jnp.inf)

    if THIN_EDGES:
        # separable 3x3 min: rows (sublane rolls) then columns (lane rolls)
        vmin = jnp.minimum(
            jnp.minimum(pltpu.roll(en, 1, axis=0), en),
            pltpu.roll(en, ETH - 1, axis=0))
        thin = jnp.minimum(
            jnp.minimum(left_nb(vmin, jnp.inf), vmin), right_nb(vmin, jnp.inf))
    else:
        thin = en

    # Zero outside the image: gaussian conv2d zero padding (and drops the +inf
    # sentinel from the padded rows/columns).
    thin = jnp.where(inside, thin, 0.0)

    if GAUSSIAN:
        k0, k1, k2 = GAUSS_1D
        g1 = (k0 * pltpu.roll(thin, 1, axis=0)
              + k1 * thin
              + k2 * pltpu.roll(thin, ETH - 1, axis=0))
        soft_full = k0 * left_nb(g1, 0.0) + k1 * g1 + k2 * right_nb(g1, 0.0)
    else:
        soft_full = thin

    soft = soft_full[8:8 + TH, :]          # aligned interior slice
    dark = DARKEN_STRENGTH * soft

    # Per-channel write: no (3, TH, Wp) temporary, no broadcast materialization.
    for c in range(3):
        o_ref[c] = jnp.clip(x_ref[c] - dark, 0.0, 1.0)


# --- wrapper ------------------------------------------------------------------
def _choose_tile_rows(H, Wp):
    # Keep the double-buffered pass-2 working set (edges + 3-ch image + 3-ch
    # output rows) around ~20 MiB so it fits v7x's 64 MiB/TC VMEM with headroom
    # for in-kernel temporaries; v5e/v6e (128 MiB) have slack to spare.
    budget = 20 * 1024 * 1024
    per_row = 2 * (1 + 3 + 3) * Wp * 4
    return max(8, min(256, budget // per_row))


@functools.partial(jax.jit, static_argnames=("tile_rows",))
def fast_line_darken(image, tile_rows=None):
    assert image.ndim == 4 and image.shape[0] == 1 and image.shape[1] == 3
    x = jnp.asarray(image, jnp.float32)[0]           # (3, H, W)
    _, H, W = x.shape

    Wp = _round_up(W, 128)                            # lane-dense last dim
    TH = tile_rows if tile_rows is not None else _choose_tile_rows(H, Wp)
    TH = min(_round_up(max(TH, 8), 8), _round_up(H, 8))
    nH = _cdiv(H, TH)
    Hp = nH * TH
    THB = TH // 8                                     # tile rows in 8-row blocks
    HB = Hp // 8

    xp = jnp.pad(x, ((0, 0), (0, Hp - H), (0, Wp - W)))

    vmem_lim = 48 * 1024 * 1024                       # < 64 MiB/TC (v7x), > defaults
    cparams = pltpu.CompilerParams(
        dimension_semantics=("parallel",),            # megacore sharding on v7x
        vmem_limit_bytes=vmem_lim,
    )

    # ---- pass 1: Sobel edge magnitude + per-tile min/max partials ----
    pass1 = pl.pallas_call(
        functools.partial(_edges_minmax_kernel, H=H, W=W, TH=TH, Wp=Wp),
        grid=(nH,),
        in_specs=[
            pl.BlockSpec((3, TH, Wp), lambda i: (0, i, 0)),
            # 8-row halo blocks above / below (block index clamped at borders;
            # border semantics restored with in-kernel row masks).
            pl.BlockSpec((3, 8, Wp), lambda i: (0, jnp.maximum(i * THB - 1, 0), 0)),
            pl.BlockSpec((3, 8, Wp), lambda i: (0, jnp.minimum(i * THB + THB, HB - 1), 0)),
        ],
        out_specs=[
            pl.BlockSpec((TH, Wp), lambda i: (i, 0)),
            pl.BlockSpec((1, 8, 128), lambda i: (i, 0, 0)),
            pl.BlockSpec((1, 8, 128), lambda i: (i, 0, 0)),
        ],
        out_shape=[
            jax.ShapeDtypeStruct((Hp, Wp), jnp.float32),
            jax.ShapeDtypeStruct((nH, 8, 128), jnp.float32),
            jax.ShapeDtypeStruct((nH, 8, 128), jnp.float32),
        ],
        compiler_params=cparams,
        cost_estimate=pl.CostEstimate(
            flops=int(30 * Hp * Wp),
            transcendentals=int(Hp * Wp),            # sqrt
            bytes_accessed=int((3 * 4 + 4) * Hp * Wp),
        ),
    )
    edges, tmin, tmax = pass1(xp, xp, xp)

    # global min/max of the edge magnitude (tiny cross-tile reduce in XLA)
    stats = jnp.stack([jnp.min(tmin), jnp.max(tmax)]).astype(jnp.float32)

    # ---- pass 2: normalize + thin + gaussian + darken ----
    pass2 = pl.pallas_call(
        functools.partial(_darken_kernel, H=H, W=W, TH=TH, Wp=Wp),
        grid=(nH,),
        in_specs=[
            pl.BlockSpec(memory_space=pltpu.MemorySpace.SMEM),       # [emin, emax]
            pl.BlockSpec((TH, Wp), lambda i: (i, 0)),
            pl.BlockSpec((8, Wp), lambda i: (jnp.maximum(i * THB - 1, 0), 0)),
            pl.BlockSpec((8, Wp), lambda i: (jnp.minimum(i * THB + THB, HB - 1), 0)),
            pl.BlockSpec((3, TH, Wp), lambda i: (0, i, 0)),
        ],
        out_specs=pl.BlockSpec((3, TH, Wp), lambda i: (0, i, 0)),
        out_shape=jax.ShapeDtypeStruct((3, Hp, Wp), jnp.float32),
        compiler_params=cparams,
        cost_estimate=pl.CostEstimate(
            flops=int(40 * Hp * Wp),
            transcendentals=0,
            bytes_accessed=int((4 + 12 + 12) * Hp * Wp),
        ),
    )
    out = pass2(stats, edges, edges, edges, xp)

    return out[:, :H, :W][None]                       # (1, 3, H, W)


# --- pure-JAX reference for a correctness check --------------------------------
def _reference(image):
    img = jnp.asarray(image, jnp.float32)[0]
    gray = GRAY_W[0] * img[0] + GRAY_W[1] * img[1] + GRAY_W[2] * img[2]
    H, W = gray.shape

    def conv(a, k):
        p = jnp.pad(a, 1)
        acc = jnp.zeros_like(a)
        for dy in range(3):
            for dx in range(3):
                acc = acc + k[dy][dx] * p[dy:dy + H, dx:dx + W]
        return acc

    ex = conv(gray, SOBEL_X)
    ey = conv(gray, SOBEL_Y)
    edges = jnp.sqrt(ex * ex + ey * ey)
    edges = (edges - edges.min()) / (edges.max() - edges.min())
    if THIN_EDGES:
        p = jnp.pad(edges, 1, constant_values=jnp.inf)
        thin = jnp.full_like(edges, jnp.inf)
        for dy in range(3):
            for dx in range(3):
                thin = jnp.minimum(thin, p[dy:dy + H, dx:dx + W])
    else:
        thin = edges
    soft = conv(thin, GAUSS_K) if GAUSSIAN else thin
    return jnp.clip(img - DARKEN_STRENGTH * soft, 0.0, 1.0)[None]


if __name__ == "__main__":
    key = jax.random.PRNGKey(0)
    k1, k2 = jax.random.split(key)

    # Case 1: forces the multi-tile path (3 row tiles of 8 with 4 padded rows)
    # and a non-multiple-of-128 width -> exercises halo clamping + row/col masks.
    x1 = jax.random.uniform(k1, (1, 3, 20, 33), dtype=jnp.float32)
    out1 = jax.block_until_ready(fast_line_darken(x1, tile_rows=8))
    ref1 = _reference(x1)
    assert out1.shape == x1.shape, out1.shape
    assert jnp.allclose(out1, ref1, atol=1e-4, rtol=1e-4), float(
        jnp.max(jnp.abs(out1 - ref1)))

    # Case 2: default tile size (single tile).
    x2 = jax.random.uniform(k2, (1, 3, 16, 16), dtype=jnp.float32)
    out2 = jax.block_until_ready(fast_line_darken(x2))
    ref2 = _reference(x2)
    assert out2.shape == x2.shape, out2.shape
    assert jnp.allclose(out2, ref2, atol=1e-4, rtol=1e-4), float(
        jnp.max(jnp.abs(out2 - ref2)))

    print("KERNEL_OK")
</pallas_src>

<mosaic_0001>
module attributes {stable_mosaic.version = 11 : i64} {
  func.func @_edges_minmax_kernel(%arg0: i32, %arg1: memref<3x8x128xf32, #tpu.memory_space<vmem>>, %arg2: memref<3x8x128xf32, #tpu.memory_space<vmem>>, %arg3: memref<3x8x128xf32, #tpu.memory_space<vmem>>, %arg4: memref<8x128xf32, #tpu.memory_space<vmem>>, %arg5: memref<1x8x128xf32, #tpu.memory_space<vmem>>, %arg6: memref<1x8x128xf32, #tpu.memory_space<vmem>>) attributes {dimension_semantics = [#tpu.dimension_semantics<parallel>], iteration_bounds = array<i64: 3>, scalar_prefetch = 0 : i64, scratch_operands = 0 : i64, tpu.core_type = #tpu.core_type<tc>, window_params = [{transform_indices = @transform_0, window_bounds = array<i64: 3, 8, 128>}, {transform_indices = @transform_1, window_bounds = array<i64: 3, 8, 128>}, {transform_indices = @transform_2, window_bounds = array<i64: 3, 8, 128>}, {transform_indices = @transform_3, window_bounds = array<i64: 8, 128>}, {transform_indices = @transform_4, window_bounds = array<i64: 1, 8, 128>}, {transform_indices = @transform_5, window_bounds = array<i64: 1, 8, 128>}]} {
    %0 = tpu.iota {dimensions = array<i32: 1>} : vector<1x128xi32>
    %c0 = arith.constant 0 : index
    %c0_0 = arith.constant 0 : index
    %c0_1 = arith.constant 0 : index
    %1 = vector.load %arg2[%c0, %c0_0, %c0_1] : memref<3x8x128xf32, #tpu.memory_space<vmem>>, vector<3x8x128xf32>
    %2 = vector.extract_strided_slice %1 {offsets = [0, 0, 0], sizes = [1, 8, 128], strides = [1, 1, 1]} : vector<3x8x128xf32> to vector<1x8x128xf32>
    %3 = vector.shape_cast %2 : vector<1x8x128xf32> to vector<8x128xf32>
    %cst = arith.constant 2.989000e-01 : f32
    %4 = vector.broadcast %cst : f32 to vector<8x128xf32>
    %5 = arith.mulf %4, %3 : vector<8x128xf32>
    %6 = vector.extract_strided_slice %1 {offsets = [1, 0, 0], sizes = [1, 8, 128], strides = [1, 1, 1]} : vector<3x8x128xf32> to vector<1x8x128xf32>
    %7 = vector.shape_cast %6 : vector<1x8x128xf32> to vector<8x128xf32>
    %cst_2 = arith.constant 5.870000e-01 : f32
    %8 = vector.broadcast %cst_2 : f32 to vector<8x128xf32>
    %9 = arith.mulf %8, %7 : vector<8x128xf32>
    %10 = arith.addf %5, %9 : vector<8x128xf32>
    %11 = vector.extract_strided_slice %1 {offsets = [2, 0, 0], sizes = [1, 8, 128], strides = [1, 1, 1]} : vector<3x8x128xf32> to vector<1x8x128xf32>
    %12 = vector.shape_cast %11 : vector<1x8x128xf32> to vector<8x128xf32>
    %cst_3 = arith.constant 1.140000e-01 : f32
    %13 = vector.broadcast %cst_3 : f32 to vector<8x128xf32>
    %14 = arith.mulf %13, %12 : vector<8x128xf32>
    %15 = arith.addf %10, %14 : vector<8x128xf32>
    %c0_4 = arith.constant 0 : index
    %c0_5 = arith.constant 0 : index
    %c0_6 = arith.constant 0 : index
    %16 = vector.load %arg1[%c0_4, %c0_5, %c0_6] : memref<3x8x128xf32, #tpu.memory_space<vmem>>, vector<3x8x128xf32>
    %17 = vector.extract_strided_slice %16 {offsets = [0, 0, 0], sizes = [1, 8, 128], strides = [1, 1, 1]} : vector<3x8x128xf32> to vector<1x8x128xf32>
    %18 = vector.shape_cast %17 : vector<1x8x128xf32> to vector<8x128xf32>
    %cst_7 = arith.constant 2.989000e-01 : f32
    %19 = vector.broadcast %cst_7 : f32 to vector<8x128xf32>
    %20 = arith.mulf %19, %18 : vector<8x128xf32>
    %21 = vector.extract_strided_slice %16 {offsets = [1, 0, 0], sizes = [1, 8, 128], strides = [1, 1, 1]} : vector<3x8x128xf32> to vector<1x8x128xf32>
    %22 = vector.shape_cast %21 : vector<1x8x128xf32> to vector<8x128xf32>
    %cst_8 = arith.constant 5.870000e-01 : f32
    %23 = vector.broadcast %cst_8 : f32 to vector<8x128xf32>
    %24 = arith.mulf %23, %22 : vector<8x128xf32>
    %25 = arith.addf %20, %24 : vector<8x128xf32>
    %26 = vector.extract_strided_slice %16 {offsets = [2, 0, 0], sizes = [1, 8, 128], strides = [1, 1, 1]} : vector<3x8x128xf32> to vector<1x8x128xf32>
    %27 = vector.shape_cast %26 : vector<1x8x128xf32> to vector<8x128xf32>
    %cst_9 = arith.constant 1.140000e-01 : f32
    %28 = vector.broadcast %cst_9 : f32 to vector<8x128xf32>
    %29 = arith.mulf %28, %27 : vector<8x128xf32>
    %30 = arith.addf %25, %29 : vector<8x128xf32>
    %c0_10 = arith.constant 0 : index
    %c0_11 = arith.constant 0 : index
    %c0_12 = arith.constant 0 : index
    %31 = vector.load %arg3[%c0_10, %c0_11, %c0_12] : memref<3x8x128xf32, #tpu.memory_space<vmem>>, vector<3x8x128xf32>
    %32 = vector.extract_strided_slice %31 {offsets = [0, 0, 0], sizes = [1, 8, 128], strides = [1, 1, 1]} : vector<3x8x128xf32> to vector<1x8x128xf32>
    %33 = vector.shape_cast %32 : vector<1x8x128xf32> to vector<8x128xf32>
    %cst_13 = arith.constant 2.989000e-01 : f32
    %34 = vector.broadcast %cst_13 : f32 to vector<8x128xf32>
    %35 = arith.mulf %34, %33 : vector<8x128xf32>
    %36 = vector.extract_strided_slice %31 {offsets = [1, 0, 0], sizes = [1, 8, 128], strides = [1, 1, 1]} : vector<3x8x128xf32> to vector<1x8x128xf32>
    %37 = vector.shape_cast %36 : vector<1x8x128xf32> to vector<8x128xf32>
    %cst_14 = arith.constant 5.870000e-01 : f32
    %38 = vector.broadcast %cst_14 : f32 to vector<8x128xf32>
    %39 = arith.mulf %38, %37 : vector<8x128xf32>
    %40 = arith.addf %35, %39 : vector<8x128xf32>
    %41 = vector.extract_strided_slice %31 {offsets = [2, 0, 0], sizes = [1, 8, 128], strides = [1, 1, 1]} : vector<3x8x128xf32> to vector<1x8x128xf32>
    %42 = vector.shape_cast %41 : vector<1x8x128xf32> to vector<8x128xf32>
    %cst_15 = arith.constant 1.140000e-01 : f32
    %43 = vector.broadcast %cst_15 : f32 to vector<8x128xf32>
    %44 = arith.mulf %43, %42 : vector<8x128xf32>
    %45 = arith.addf %40, %44 : vector<8x128xf32>
    %46 = tpu.concatenate %15, %30, %45 in 0 : vector<8x128xf32>, vector<8x128xf32>, vector<8x128xf32> -> vector<24x128xf32>
    %47 = tpu.iota {dimensions = array<i32: 0>} : vector<24x1xi32>
    %c8_i32 = arith.constant 8 : i32
    %48 = arith.muli %arg0, %c8_i32 : i32
    %c8_i32_16 = arith.constant 8 : i32
    %49 = arith.subi %48, %c8_i32_16 : i32
    %50 = vector.broadcast %49 : i32 to vector<24x1xi32>
    %51 = arith.addi %47, %50 : vector<24x1xi32>
    %c0_i32 = arith.constant 0 : i32
    %52 = vector.broadcast %c0_i32 : i32 to vector<24x1xi32>
    %53 = arith.cmpi sge, %51, %52 : vector<24x1xi32>
    %c20_i32 = arith.constant 20 : i32
    %54 = vector.broadcast %c20_i32 : i32 to vector<24x1xi32>
    %55 = arith.cmpi slt, %51, %54 : vector<24x1xi32>
    %56 = arith.andi %53, %55 : vector<24x1xi1>
    %cst_17 = arith.constant 0.000000e+00 : f32
    %57 = vector.shape_cast %56 : vector<24x1xi1> to vector<24x1xi1>
    %58 = vector.broadcast %57 : vector<24x1xi1> to vector<24x128xi1>
    %59 = vector.broadcast %cst_17 : f32 to vector<24x128xf32>
    %60 = arith.select %58, %46, %59 : vector<24x128xi1>, vector<24x128xf32>
    %c1_i32 = arith.constant 1 : i32
    %61 = tpu.dynamic_rotate %60 by %c1_i32 dim 0 : vector<24x128xf32>, i32 -> vector<24x128xf32>
    %c23_i32 = arith.constant 23 : i32
    %62 = tpu.dynamic_rotate %60 by %c23_i32 dim 0 : vector<24x128xf32>, i32 -> vector<24x128xf32>
    %cst_18 = arith.constant 2.000000e+00 : f32
    %63 = vector.broadcast %cst_18 : f32 to vector<24x128xf32>
    %64 = arith.mulf %63, %60 : vector<24x128xf32>
    %65 = arith.addf %61, %64 : vector<24x128xf32>
    %66 = arith.addf %65, %62 : vector<24x128xf32>
    %67 = arith.subf %62, %61 : vector<24x128xf32>
    %c32_i32 = arith.constant 32 : i32
    %68 = vector.broadcast %c32_i32 : i32 to vector<1x128xi32>
    %69 = arith.cmpi sge, %0, %68 : vector<1x128xi32>
    %c127_i32 = arith.constant 127 : i32
    %70 = tpu.dynamic_rotate %66 by %c127_i32 dim 1 : vector<24x128xf32>, i32 -> vector<24x128xf32>
    %cst_19 = arith.constant 0.000000e+00 : f32
    %71 = vector.shape_cast %69 : vector<1x128xi1> to vector<1x128xi1>
    %72 = vector.broadcast %71 : vector<1x128xi1> to vector<24x128xi1>
    %73 = vector.broadcast %cst_19 : f32 to vector<24x128xf32>
    %74 = arith.select %72, %73, %70 : vector<24x128xi1>, vector<24x128xf32>
    %c0_i32_20 = arith.constant 0 : i32
    %75 = vector.broadcast %c0_i32_20 : i32 to vector<1x128xi32>
    %76 = arith.cmpi eq, %0, %75 : vector<1x128xi32>
    %c1_i32_21 = arith.constant 1 : i32
    %77 = tpu.dynamic_rotate %66 by %c1_i32_21 dim 1 : vector<24x128xf32>, i32 -> vector<24x128xf32>
    %cst_22 = arith.constant 0.000000e+00 : f32
    %78 = vector.shape_cast %76 : vector<1x128xi1> to vector<1x128xi1>
    %79 = vector.broadcast %78 : vector<1x128xi1> to vector<24x128xi1>
    %80 = vector.broadcast %cst_22 : f32 to vector<24x128xf32>
    %81 = arith.select %79, %80, %77 : vector<24x128xi1>, vector<24x128xf32>
    %82 = arith.subf %74, %81 : vector<24x128xf32>
    %c0_i32_23 = arith.constant 0 : i32
    %83 = vector.broadcast %c0_i32_23 : i32 to vector<1x128xi32>
    %84 = arith.cmpi eq, %0, %83 : vector<1x128xi32>
    %c1_i32_24 = arith.constant 1 : i32
    %85 = tpu.dynamic_rotate %67 by %c1_i32_24 dim 1 : vector<24x128xf32>, i32 -> vector<24x128xf32>
    %cst_25 = arith.constant 0.000000e+00 : f32
    %86 = vector.shape_cast %84 : vector<1x128xi1> to vector<1x128xi1>
    %87 = vector.broadcast %86 : vector<1x128xi1> to vector<24x128xi1>
    %88 = vector.broadcast %cst_25 : f32 to vector<24x128xf32>
    %89 = arith.select %87, %88, %85 : vector<24x128xi1>, vector<24x128xf32>
    %cst_26 = arith.constant 2.000000e+00 : f32
    %90 = vector.broadcast %cst_26 : f32 to vector<24x128xf32>
    %91 = arith.mulf %90, %67 : vector<24x128xf32>
    %92 = arith.addf %89, %91 : vector<24x128xf32>
    %c32_i32_27 = arith.constant 32 : i32
    %93 = vector.broadcast %c32_i32_27 : i32 to vector<1x128xi32>
    %94 = arith.cmpi sge, %0, %93 : vector<1x128xi32>
    %c127_i32_28 = arith.constant 127 : i32
    %95 = tpu.dynamic_rotate %67 by %c127_i32_28 dim 1 : vector<24x128xf32>, i32 -> vector<24x128xf32>
    %cst_29 = arith.constant 0.000000e+00 : f32
    %96 = vector.shape_cast %94 : vector<1x128xi1> to vector<1x128xi1>
    %97 = vector.broadcast %96 : vector<1x128xi1> to vector<24x128xi1>
    %98 = vector.broadcast %cst_29 : f32 to vector<24x128xf32>
    %99 = arith.select %97, %98, %95 : vector<24x128xi1>, vector<24x128xf32>
    %100 = arith.addf %92, %99 : vector<24x128xf32>
    %101 = arith.mulf %82, %82 : vector<24x128xf32>
    %102 = arith.mulf %100, %100 : vector<24x128xf32>
    %103 = arith.addf %101, %102 : vector<24x128xf32>
    %104 = math.sqrt %103 : vector<24x128xf32>
    %105 = vector.extract_strided_slice %104 {offsets = [8, 0], sizes = [8, 128], strides = [1, 1]} : vector<24x128xf32> to vector<8x128xf32>
    %c0_30 = arith.constant 0 : index
    %c0_31 = arith.constant 0 : index
    %106 = vector.load %arg4[%c0_30, %c0_31] : memref<8x128xf32, #tpu.memory_space<vmem>>, vector<8x128xf32>
    tpu.vector_store %arg4[%c0_30, %c0_31], %105 {strides = array<i32>} : memref<8x128xf32, #tpu.memory_space<vmem>>, vector<8x128xf32>,
    %107 = tpu.iota {dimensions = array<i32: 0>} : vector<8x1xi32>
    %c8_i32_32 = arith.constant 8 : i32
    %108 = arith.muli %arg0, %c8_i32_32 : i32
    %109 = vector.broadcast %108 : i32 to vector<8x1xi32>
    %110 = arith.addi %107, %109 : vector<8x1xi32>
    %c20_i32_33 = arith.constant 20 : i32
    %111 = vector.broadcast %c20_i32_33 : i32 to vector<8x1xi32>
    %112 = arith.cmpi slt, %110, %111 : vector<8x1xi32>
    %c33_i32 = arith.constant 33 : i32
    %113 = vector.broadcast %c33_i32 : i32 to vector<1x128xi32>
    %114 = arith.cmpi slt, %0, %113 : vector<1x128xi32>
    %115 = vector.broadcast %112 : vector<8x1xi1> to vector<8x128xi1>
    %116 = vector.broadcast %114 : vector<1x128xi1> to vector<8x128xi1>
    %117 = arith.andi %115, %116 : vector<8x128xi1>
    %cst_34 = arith.constant 0x7F800000 : f32
    %118 = vector.broadcast %cst_34 : f32 to vector<8x128xf32>
    %119 = arith.select %117, %105, %118 : vector<8x128xi1>, vector<8x128xf32>
    %cst_35 = arith.constant dense<0x7F800000> : vector<128xf32>
    %120 = vector.multi_reduction <minimumf>, %119, %cst_35 [0] : vector<8x128xf32> to vector<128xf32>
    %121 = vector.shape_cast %120 : vector<128xf32> to vector<1x128xf32>
    %122 = vector.shape_cast %121 : vector<1x128xf32> to vector<1x1x128xf32>
    %cst_36 = arith.constant dense<0x7F800000> : vector<1xf32>
    %123 = vector.multi_reduction <minimumf>, %122, %cst_36 [1, 2] : vector<1x1x128xf32> to vector<1xf32>
    %124 = vector.shape_cast %123 : vector<1xf32> to vector<1x1x1xf32>
    %125 = vector.extract %124[0, 0, 0] : f32 from vector<1x1x1xf32>
    %cst_37 = arith.constant 0xFF800000 : f32
    %126 = vector.broadcast %cst_37 : f32 to vector<8x128xf32>
    %127 = arith.select %117, %105, %126 : vector<8x128xi1>, vector<8x128xf32>
    %cst_38 = arith.constant dense<0xFF800000> : vector<128xf32>
    %128 = vector.multi_reduction <maximumf>, %127, %cst_38 [0] : vector<8x128xf32> to vector<128xf32>
    %129 = vector.shape_cast %128 : vector<128xf32> to vector<1x128xf32>
    %130 = vector.shape_cast %129 : vector<1x128xf32> to vector<1x1x128xf32>
    %cst_39 = arith.constant dense<0xFF800000> : vector<1xf32>
    %131 = vector.multi_reduction <maximumf>, %130, %cst_39 [1, 2] : vector<1x1x128xf32> to vector<1xf32>
    %132 = vector.shape_cast %131 : vector<1xf32> to vector<1x1x1xf32>
    %133 = vector.extract %132[0, 0, 0] : f32 from vector<1x1x1xf32>
    %134 = vector.broadcast %125 : f32 to vector<1x8x128xf32>
    %c0_40 = arith.constant 0 : index
    %c0_41 = arith.constant 0 : index
    %c0_42 = arith.constant 0 : index
    %135 = vector.load %arg5[%c0_40, %c0_41, %c0_42] : memref<1x8x128xf32, #tpu.memory_space<vmem>>, vector<1x8x128xf32>
    tpu.vector_store %arg5[%c0_40, %c0_41, %c0_42], %134 {strides = array<i32>} : memref<1x8x128xf32, #tpu.memory_space<vmem>>, vector<1x8x128xf32>,
    %136 = vector.broadcast %133 : f32 to vector<1x8x128xf32>
    %c0_43 = arith.constant 0 : index
    %c0_44 = arith.constant 0 : index
    %c0_45 = arith.constant 0 : index
    %137 = vector.load %arg6[%c0_43, %c0_44, %c0_45] : memref<1x8x128xf32, #tpu.memory_space<vmem>>, vector<1x8x128xf32>
    tpu.vector_store %arg6[%c0_43, %c0_44, %c0_45], %136 {strides = array<i32>} : memref<1x8x128xf32, #tpu.memory_space<vmem>>, vector<1x8x128xf32>,
    return
  }
  func.func @transform_0(%arg0: i32) -> (i32, i32, i32) {
    %c0_i32 = arith.constant 0 : i32
    %c0_i32_0 = arith.constant 0 : i32
    %c0_i32_1 = arith.constant 0 : i32
    return %c0_i32, %arg0, %c0_i32_0 : i32, i32, i32
  }
  func.func @transform_1(%arg0: i32) -> (i32, i32, i32) {
    %c1_i32 = arith.constant 1 : i32
    %0 = arith.muli %arg0, %c1_i32 : i32
    %c1_i32_0 = arith.constant 1 : i32
    %1 = arith.subi %0, %c1_i32_0 : i32
    %c0_i32 = arith.constant 0 : i32
    %2 = arith.maxsi %1, %c0_i32 : i32
    %c0_i32_1 = arith.constant 0 : i32
    %c0_i32_2 = arith.constant 0 : i32
    %c0_i32_3 = arith.constant 0 : i32
    return %c0_i32_1, %2, %c0_i32_2 : i32, i32, i32
  }
  func.func @transform_2(%arg0: i32) -> (i32, i32, i32) {
    %c1_i32 = arith.constant 1 : i32
    %0 = arith.muli %arg0, %c1_i32 : i32
    %c1_i32_0 = arith.constant 1 : i32
    %1 = arith.addi %0, %c1_i32_0 : i32
    %c2_i32 = arith.constant 2 : i32
    %2 = arith.minsi %1, %c2_i32 : i32
    %c0_i32 = arith.constant 0 : i32
    %c0_i32_1 = arith.constant 0 : i32
    %c0_i32_2 = arith.constant 0 : i32
    return %c0_i32, %2, %c0_i32_1 : i32, i32, i32
  }
  func.func @transform_3(%arg0: i32) -> (i32, i32) {
    %c0_i32 = arith.constant 0 : i32
    %c0_i32_0 = arith.constant 0 : i32
    return %arg0, %c0_i32 : i32, i32
  }
  func.func @transform_4(%arg0: i32) -> (i32, i32, i32) {
    %c0_i32 = arith.constant 0 : i32
    %c0_i32_0 = arith.constant 0 : i32
    %c0_i32_1 = arith.constant 0 : i32
    return %arg0, %c0_i32, %c0_i32_0 : i32, i32, i32
  }
  func.func @transform_5(%arg0: i32) -> (i32, i32, i32) {
    %c0_i32 = arith.constant 0 : i32
    %c0_i32_0 = arith.constant 0 : i32
    %c0_i32_1 = arith.constant 0 : i32
    return %arg0, %c0_i32, %c0_i32_0 : i32, i32, i32
  }
}

module attributes {stable_mosaic.version = 11 : i64} {
  func.func @_darken_kernel(%arg0: i32, %arg1: memref<2xf32, #tpu.memory_space<smem>>, %arg2: memref<8x128xf32, #tpu.memory_space<vmem>>, %arg3: memref<8x128xf32, #tpu.memory_space<vmem>>, %arg4: memref<8x128xf32, #tpu.memory_space<vmem>>, %arg5: memref<3x8x128xf32, #tpu.memory_space<vmem>>, %arg6: memref<3x8x128xf32, #tpu.memory_space<vmem>>) attributes {dimension_semantics = [#tpu.dimension_semantics<parallel>], iteration_bounds = array<i64: 3>, scalar_prefetch = 0 : i64, scratch_operands = 0 : i64, tpu.core_type = #tpu.core_type<tc>, window_params = [{transform_indices = @transform_0, window_bounds = array<i64: 2>}, {transform_indices = @transform_1, window_bounds = array<i64: 8, 128>}, {transform_indices = @transform_2, window_bounds = array<i64: 8, 128>}, {transform_indices = @transform_3, window_bounds = array<i64: 8, 128>}, {transform_indices = @transform_4, window_bounds = array<i64: 3, 8, 128>}, {transform_indices = @transform_5, window_bounds = array<i64: 3, 8, 128>}]} {
    %0 = tpu.iota {dimensions = array<i32: 1>} : vector<1x128xi32>
    %c0 = arith.constant 0 : index
    %1 = memref.load %arg1[%c0] : memref<2xf32, #tpu.memory_space<smem>>
    %c1 = arith.constant 1 : index
    %2 = memref.load %arg1[%c1] : memref<2xf32, #tpu.memory_space<smem>>
    %3 = arith.subf %2, %1 : f32
    %4 = vector.broadcast %3 : f32 to vector<1x1xf32>
    %5 = tpu.reciprocal %4 : vector<1x1xf32> -> vector<1x1xf32>
    %c0_0 = arith.constant 0 : index
    %c0_1 = arith.constant 0 : index
    %6 = vector.load %arg3[%c0_0, %c0_1] : memref<8x128xf32, #tpu.memory_space<vmem>>, vector<8x128xf32>
    %c0_2 = arith.constant 0 : index
    %c0_3 = arith.constant 0 : index
    %7 = vector.load %arg2[%c0_2, %c0_3] : memref<8x128xf32, #tpu.memory_space<vmem>>, vector<8x128xf32>
    %c0_4 = arith.constant 0 : index
    %c0_5 = arith.constant 0 : index
    %8 = vector.load %arg4[%c0_4, %c0_5] : memref<8x128xf32, #tpu.memory_space<vmem>>, vector<8x128xf32>
    %9 = tpu.concatenate %6, %7, %8 in 0 : vector<8x128xf32>, vector<8x128xf32>, vector<8x128xf32> -> vector<24x128xf32>
    %10 = tpu.iota {dimensions = array<i32: 0>} : vector<24x1xi32>
    %c8_i32 = arith.constant 8 : i32
    %11 = arith.muli %arg0, %c8_i32 : i32
    %c8_i32_6 = arith.constant 8 : i32
    %12 = arith.subi %11, %c8_i32_6 : i32
    %13 = vector.broadcast %12 : i32 to vector<24x1xi32>
    %14 = arith.addi %10, %13 : vector<24x1xi32>
    %c0_i32 = arith.constant 0 : i32
    %15 = vector.broadcast %c0_i32 : i32 to vector<24x1xi32>
    %16 = arith.cmpi sge, %14, %15 : vector<24x1xi32>
    %c20_i32 = arith.constant 20 : i32
    %17 = vector.broadcast %c20_i32 : i32 to vector<24x1xi32>
    %18 = arith.cmpi slt, %14, %17 : vector<24x1xi32>
    %19 = arith.andi %16, %18 : vector<24x1xi1>
    %c33_i32 = arith.constant 33 : i32
    %20 = vector.broadcast %c33_i32 : i32 to vector<1x128xi32>
    %21 = arith.cmpi slt, %0, %20 : vector<1x128xi32>
    %22 = vector.broadcast %19 : vector<24x1xi1> to vector<24x128xi1>
    %23 = vector.broadcast %21 : vector<1x128xi1> to vector<24x128xi1>
    %24 = arith.andi %22, %23 : vector<24x128xi1>
    %25 = vector.broadcast %1 : f32 to vector<24x128xf32>
    %26 = arith.subf %9, %25 : vector<24x128xf32>
    %27 = vector.broadcast %5 : vector<1x1xf32> to vector<24x128xf32>
    %28 = arith.mulf %26, %27 : vector<24x128xf32>
    %cst = arith.constant 0x7F800000 : f32
    %29 = vector.broadcast %cst : f32 to vector<24x128xf32>
    %30 = arith.select %24, %28, %29 : vector<24x128xi1>, vector<24x128xf32>
    %c1_i32 = arith.constant 1 : i32
    %31 = tpu.dynamic_rotate %30 by %c1_i32 dim 0 : vector<24x128xf32>, i32 -> vector<24x128xf32>
    %32 = arith.minimumf %31, %30 : vector<24x128xf32>
    %c23_i32 = arith.constant 23 : i32
    %33 = tpu.dynamic_rotate %30 by %c23_i32 dim 0 : vector<24x128xf32>, i32 -> vector<24x128xf32>
    %34 = arith.minimumf %32, %33 : vector<24x128xf32>
    %c0_i32_7 = arith.constant 0 : i32
    %35 = vector.broadcast %c0_i32_7 : i32 to vector<1x128xi32>
    %36 = arith.cmpi eq, %0, %35 : vector<1x128xi32>
    %c1_i32_8 = arith.constant 1 : i32
    %37 = tpu.dynamic_rotate %34 by %c1_i32_8 dim 1 : vector<24x128xf32>, i32 -> vector<24x128xf32>
    %cst_9 = arith.constant 0x7F800000 : f32
    %38 = vector.shape_cast %36 : vector<1x128xi1> to vector<1x128xi1>
    %39 = vector.broadcast %38 : vector<1x128xi1> to vector<24x128xi1>
    %40 = vector.broadcast %cst_9 : f32 to vector<24x128xf32>
    %41 = arith.select %39, %40, %37 : vector<24x128xi1>, vector<24x128xf32>
    %42 = arith.minimumf %41, %34 : vector<24x128xf32>
    %c32_i32 = arith.constant 32 : i32
    %43 = vector.broadcast %c32_i32 : i32 to vector<1x128xi32>
    %44 = arith.cmpi sge, %0, %43 : vector<1x128xi32>
    %c127_i32 = arith.constant 127 : i32
    %45 = tpu.dynamic_rotate %34 by %c127_i32 dim 1 : vector<24x128xf32>, i32 -> vector<24x128xf32>
    %cst_10 = arith.constant 0x7F800000 : f32
    %46 = vector.shape_cast %44 : vector<1x128xi1> to vector<1x128xi1>
    %47 = vector.broadcast %46 : vector<1x128xi1> to vector<24x128xi1>
    %48 = vector.broadcast %cst_10 : f32 to vector<24x128xf32>
    %49 = arith.select %47, %48, %45 : vector<24x128xi1>, vector<24x128xf32>
    %50 = arith.minimumf %42, %49 : vector<24x128xf32>
    %cst_11 = arith.constant 0.000000e+00 : f32
    %51 = vector.broadcast %cst_11 : f32 to vector<24x128xf32>
    %52 = arith.select %24, %50, %51 : vector<24x128xi1>, vector<24x128xf32>
    %c1_i32_12 = arith.constant 1 : i32
    %53 = tpu.dynamic_rotate %52 by %c1_i32_12 dim 0 : vector<24x128xf32>, i32 -> vector<24x128xf32>
    %cst_13 = arith.constant 0.274068624 : f32
    %54 = vector.broadcast %cst_13 : f32 to vector<24x128xf32>
    %55 = arith.mulf %54, %53 : vector<24x128xf32>
    %cst_14 = arith.constant 0.451862752 : f32
    %56 = vector.broadcast %cst_14 : f32 to vector<24x128xf32>
    %57 = arith.mulf %56, %52 : vector<24x128xf32>
    %58 = arith.addf %55, %57 : vector<24x128xf32>
    %c23_i32_15 = arith.constant 23 : i32
    %59 = tpu.dynamic_rotate %52 by %c23_i32_15 dim 0 : vector<24x128xf32>, i32 -> vector<24x128xf32>
    %cst_16 = arith.constant 0.274068624 : f32
    %60 = vector.broadcast %cst_16 : f32 to vector<24x128xf32>
    %61 = arith.mulf %60, %59 : vector<24x128xf32>
    %62 = arith.addf %58, %61 : vector<24x128xf32>
    %c0_i32_17 = arith.constant 0 : i32
    %63 = vector.broadcast %c0_i32_17 : i32 to vector<1x128xi32>
    %64 = arith.cmpi eq, %0, %63 : vector<1x128xi32>
    %c1_i32_18 = arith.constant 1 : i32
    %65 = tpu.dynamic_rotate %62 by %c1_i32_18 dim 1 : vector<24x128xf32>, i32 -> vector<24x128xf32>
    %cst_19 = arith.constant 0.000000e+00 : f32
    %66 = vector.shape_cast %64 : vector<1x128xi1> to vector<1x128xi1>
    %67 = vector.broadcast %66 : vector<1x128xi1> to vector<24x128xi1>
    %68 = vector.broadcast %cst_19 : f32 to vector<24x128xf32>
    %69 = arith.select %67, %68, %65 : vector<24x128xi1>, vector<24x128xf32>
    %cst_20 = arith.constant 0.274068624 : f32
    %70 = vector.broadcast %cst_20 : f32 to vector<24x128xf32>
    %71 = arith.mulf %70, %69 : vector<24x128xf32>
    %cst_21 = arith.constant 0.451862752 : f32
    %72 = vector.broadcast %cst_21 : f32 to vector<24x128xf32>
    %73 = arith.mulf %72, %62 : vector<24x128xf32>
    %74 = arith.addf %71, %73 : vector<24x128xf32>
    %c32_i32_22 = arith.constant 32 : i32
    %75 = vector.broadcast %c32_i32_22 : i32 to vector<1x128xi32>
    %76 = arith.cmpi sge, %0, %75 : vector<1x128xi32>
    %c127_i32_23 = arith.constant 127 : i32
    %77 = tpu.dynamic_rotate %62 by %c127_i32_23 dim 1 : vector<24x128xf32>, i32 -> vector<24x128xf32>
    %cst_24 = arith.constant 0.000000e+00 : f32
    %78 = vector.shape_cast %76 : vector<1x128xi1> to vector<1x128xi1>
    %79 = vector.broadcast %78 : vector<1x128xi1> to vector<24x128xi1>
    %80 = vector.broadcast %cst_24 : f32 to vector<24x128xf32>
    %81 = arith.select %79, %80, %77 : vector<24x128xi1>, vector<24x128xf32>
    %cst_25 = arith.constant 0.274068624 : f32
    %82 = vector.broadcast %cst_25 : f32 to vector<24x128xf32>
    %83 = arith.mulf %82, %81 : vector<24x128xf32>
    %84 = arith.addf %74, %83 : vector<24x128xf32>
    %85 = vector.extract_strided_slice %84 {offsets = [8, 0], sizes = [8, 128], strides = [1, 1]} : vector<24x128xf32> to vector<8x128xf32>
    %cst_26 = arith.constant 0.699999988 : f32
    %86 = vector.broadcast %cst_26 : f32 to vector<8x128xf32>
    %87 = arith.mulf %86, %85 : vector<8x128xf32>
    %c0_27 = arith.constant 0 : index
    %c0_28 = arith.constant 0 : index
    %c0_29 = arith.constant 0 : index
    %88 = vector.load %arg5[%c0_27, %c0_28, %c0_29] : memref<3x8x128xf32, #tpu.memory_space<vmem>>, vector<1x8x128xf32>
    %89 = vector.shape_cast %88 : vector<1x8x128xf32> to vector<8x128xf32>
    %90 = arith.subf %89, %87 : vector<8x128xf32>
    %cst_30 = arith.constant 0.000000e+00 : f32
    %cst_31 = arith.constant 1.000000e+00 : f32
    %91 = vector.broadcast %cst_30 : f32 to vector<8x128xf32>
    %92 = arith.maximumf %91, %90 : vector<8x128xf32>
    %93 = vector.broadcast %cst_31 : f32 to vector<8x128xf32>
    %94 = arith.minimumf %93, %92 : vector<8x128xf32>
    %c0_32 = arith.constant 0 : index
    %c0_33 = arith.constant 0 : index
    %c0_34 = arith.constant 0 : index
    %95 = vector.load %arg6[%c0_32, %c0_33, %c0_34] : memref<3x8x128xf32, #tpu.memory_space<vmem>>, vector<1x8x128xf32>
    %96 = vector.shape_cast %95 : vector<1x8x128xf32> to vector<8x128xf32>
    %97 = vector.shape_cast %94 : vector<8x128xf32> to vector<1x8x128xf32>
    tpu.vector_store %arg6[%c0_32, %c0_33, %c0_34], %97 {strides = array<i32>} : memref<3x8x128xf32, #tpu.memory_space<vmem>>, vector<1x8x128xf32>,
    %c1_35 = arith.constant 1 : index
    %c0_36 = arith.constant 0 : index
    %c0_37 = arith.constant 0 : index
    %98 = vector.load %arg5[%c1_35, %c0_36, %c0_37] : memref<3x8x128xf32, #tpu.memory_space<vmem>>, vector<1x8x128xf32>
    %99 = vector.shape_cast %98 : vector<1x8x128xf32> to vector<8x128xf32>
    %100 = arith.subf %99, %87 : vector<8x128xf32>
    %cst_38 = arith.constant 0.000000e+00 : f32
    %cst_39 = arith.constant 1.000000e+00 : f32
    %101 = vector.broadcast %cst_38 : f32 to vector<8x128xf32>
    %102 = arith.maximumf %101, %100 : vector<8x128xf32>
    %103 = vector.broadcast %cst_39 : f32 to vector<8x128xf32>
    %104 = arith.minimumf %103, %102 : vector<8x128xf32>
    %c1_40 = arith.constant 1 : index
    %c0_41 = arith.constant 0 : index
    %c0_42 = arith.constant 0 : index
    %105 = vector.load %arg6[%c1_40, %c0_41, %c0_42] : memref<3x8x128xf32, #tpu.memory_space<vmem>>, vector<1x8x128xf32>
    %106 = vector.shape_cast %105 : vector<1x8x128xf32> to vector<8x128xf32>
    %107 = vector.shape_cast %104 : vector<8x128xf32> to vector<1x8x128xf32>
    tpu.vector_store %arg6[%c1_40, %c0_41, %c0_42], %107 {strides = array<i32>} : memref<3x8x128xf32, #tpu.memory_space<vmem>>, vector<1x8x128xf32>,
    %c2 = arith.constant 2 : index
    %c0_43 = arith.constant 0 : index
    %c0_44 = arith.constant 0 : index
    %108 = vector.load %arg5[%c2, %c0_43, %c0_44] : memref<3x8x128xf32, #tpu.memory_space<vmem>>, vector<1x8x128xf32>
    %109 = vector.shape_cast %108 : vector<1x8x128xf32> to vector<8x128xf32>
    %110 = arith.subf %109, %87 : vector<8x128xf32>
    %cst_45 = arith.constant 0.000000e+00 : f32
    %cst_46 = arith.constant 1.000000e+00 : f32
    %111 = vector.broadcast %cst_45 : f32 to vector<8x128xf32>
    %112 = arith.maximumf %111, %110 : vector<8x128xf32>
    %113 = vector.broadcast %cst_46 : f32 to vector<8x128xf32>
    %114 = arith.minimumf %113, %112 : vector<8x128xf32>
    %c2_47 = arith.constant 2 : index
    %c0_48 = arith.constant 0 : index
    %c0_49 = arith.constant 0 : index
    %115 = vector.load %arg6[%c2_47, %c0_48, %c0_49] : memref<3x8x128xf32, #tpu.memory_space<vmem>>, vector<1x8x128xf32>
    %116 = vector.shape_cast %115 : vector<1x8x128xf32> to vector<8x128xf32>
    %117 = vector.shape_cast %114 : vector<8x128xf32> to vector<1x8x128xf32>
    tpu.vector_store %arg6[%c2_47, %c0_48, %c0_49], %117 {strides = array<i32>} : memref<3x8x128xf32, #tpu.memory_space<vmem>>, vector<1x8x128xf32>,
    return
  }
  func.func @transform_0(%arg0: i32) -> i32 {
    %c0_i32 = arith.constant 0 : i32
    %c0_i32_0 = arith.constant 0 : i32
    return %c0_i32 : i32
  }
  func.func @transform_1(%arg0: i32) -> (i32, i32) {
    %c0_i32 = arith.constant 0 : i32
    %c0_i32_0 = arith.constant 0 : i32
    return %arg0, %c0_i32 : i32, i32
  }
  func.func @transform_2(%arg0: i32) -> (i32, i32) {
    %c1_i32 = arith.constant 1 : i32
    %0 = arith.muli %arg0, %c1_i32 : i32
    %c1_i32_0 = arith.constant 1 : i32
    %1 = arith.subi %0, %c1_i32_0 : i32
    %c0_i32 = arith.constant 0 : i32
    %2 = arith.maxsi %1, %c0_i32 : i32
    %c0_i32_1 = arith.constant 0 : i32
    %c0_i32_2 = arith.constant 0 : i32
    return %2, %c0_i32_1 : i32, i32
  }
  func.func @transform_3(%arg0: i32) -> (i32, i32) {
    %c1_i32 = arith.constant 1 : i32
    %0 = arith.muli %arg0, %c1_i32 : i32
    %c1_i32_0 = arith.constant 1 : i32
    %1 = arith.addi %0, %c1_i32_0 : i32
    %c2_i32 = arith.constant 2 : i32
    %2 = arith.minsi %1, %c2_i32 : i32
    %c0_i32 = arith.constant 0 : i32
    %c0_i32_1 = arith.constant 0 : i32
    return %2, %c0_i32 : i32, i32
  }
  func.func @transform_4(%arg0: i32) -> (i32, i32, i32) {
    %c0_i32 = arith.constant 0 : i32
    %c0_i32_0 = arith.constant 0 : i32
    %c0_i32_1 = arith.constant 0 : i32
    return %c0_i32, %arg0, %c0_i32_0 : i32, i32, i32
  }
  func.func @transform_5(%arg0: i32) -> (i32, i32, i32) {
    %c0_i32 = arith.constant 0 : i32
    %c0_i32_0 = arith.constant 0 : i32
    %c0_i32_1 = arith.constant 0 : i32
    return %c0_i32, %arg0, %c0_i32_0 : i32, i32, i32
  }
}

</mosaic_0001>

<bundles_post_ra>
// kernel: fast_line_darken.3
= control target key start
LH: loop header
LB: loop body
LE: loop exit
PB: predicated region body
PF: predicated region fallthrough
CT: control target
= control target key end

     0   :  { %10 = vsyncpa [#allocation3], 0  ;;  %s820_s18 = smov 0   ;;  %s822_s19 = smov 0   ;;  %s1018_s0 = inlined_call_operand.vmem [shape: f32[2], index: 0, kind: input, shape index: {}]   ;;  %s1019_s1 = inlined_call_operand.vmem [shape: f32[24,128], index: 1, kind: input, shape index: {}, may-alias: {1,2,3}]   ;;  %s1020_s2 = inlined_call_operand.vmem [shape: f32[24,128], index: 2, kind: input, shape index: {}, may-alias: {1,2,3}]   ;;  %s1021_s3 = inlined_call_operand.vmem [shape: f32[24,128], index: 3, kind: input, shape index: {}, may-alias: {1,2,3}]   ;;  %s1022_s4 = inlined_call_operand.vmem [shape: f32[3,24,128], index: 4, kind: input, shape index: {}]   ;;  %s1023_s5 = inlined_call_operand.vmem [shape: f32[3,24,128], index: 5, kind: output, shape index: {}]  }
   0x1   :  { %s824_s20 = smov 0  }
   0x2 LB: > { %s836_s21 = sadd.s32 4294967295, %s785_s20   ;;  %s839_s22 = sadd.s32 1, %s785_s20   ;;  %s785_s20 = sphi %s824_s20, %s1037_s20   ;;  %s781_s19 = sphi %s822_s19, %s1036_s19   ;;  %s777_s18 = sphi %s820_s18, %s1035_s18  }
   0x3   : > { %s131_s23 = ssub.s32 %s785_s20, %s839_s22  ;;  %s134_s24 = sadd.s32 1, %s781_s19 }
   0x4   : > { %p132_p0 = scmp.eq.s32.totalorder %s131_s23, 0  ;;  %p141_p1 = scmp.ne.s32.totalorder %s781_s19, %s777_s18 }
   0x5   : > { %p142_p2 = scmp.eq.s32.totalorder %s785_s20, 0  ;;  %p171_p3 = scmp.eq.s32.totalorder %s836_s21, 2 }
   0x6   : > { %s849_s25 = scalar_select %p132_p0, %s781_s19, %s134_s24  }
   0x7   : > { %p851_p4 = por %p142_p2, %p141_p1  ;;  %p855_p5 = por %p171_p3, %p141_p1 }
   0x8   : > { %p673_p6 = scmp.ge.s32.totalorder %s785_s20, 1  ;;  %p184_p7 = scmp.lt.s32.totalorder %s785_s20, 4 }
   0x9   : > { %s1025_s27 = scalar_select %p855_p5, 1, 0 }
   0xa   : > { %p713_p8 = scmp.eq.s32.totalorder %s836_s21, 0  ;;  %p862_p9 = pnand %p673_p6, %p184_p7 }
   0xb   : > { %s197_s6 = sshll.u32 %s1018_s0, 4  ;;  %s198_s6 = int_to_ptr.vmem [resolvable:$true] %s197_s6 }
   0xc   : > { %p709_p10 = pneg %p862_p9  ;;  %s744_s7 = scalar_lea.vmem %s198_s6, 16 }
   0xd   : > { %p745_p12 = scmp.ne.s32.totalorder %s198_s6, %s744_s7  ;;  %p752_p2 = scmp.lt.s32.totalorder %s198_s6, %s198_s6 }
   0xe   : > { %p710_p11 = pnand %p713_p8, %p709_p10  ;;  %p753_p3 = scmp.lt.s32.totalorder %s744_s7, %s744_s7 }
  0x10   : > { %p746_p13 = pneg %p710_p11  ;;  %p754_p6 = por %p753_p3, %p752_p2 }
  0x12   : > { %p747_p0 = pnand %p746_p13, %p745_p12 }
  0x14   : > { %p748_p1 = pneg %p747_p0 }
  0x16   : > { %p755_p7 = pnand %p754_p6, %p748_p1 }
  0x18   : > { %758 = shalt.err (!%p755_p7)
}
  0x19   : > { %s787_s8 = smov [#allocation2]   ;;  %p675_p5 = scmp.ge.s32.totalorder %s785_s20, 3 }
  0x1a   : > { %712 = dma.vmem_to_smem (!%p710_p11), %s198_s6, 16, %s787_s8, [#allocation3]  }
  0x1b   : > { %204 = sbr.rel (%p675_p5) target bundleno = 38 (0x26), region = 20 }
  0x20   : > { %240 = sbr.rel (!%p851_p4) target bundleno = 38 (0x26), region = 36  ;;  %s242_s9 = sand.u32 (%p851_p4), 1, %s781_s19  }
  0x21   : > { %s676_s10 = sshll.u32 (%p851_p4), %s785_s20, 3  ;;  %s703_s11 = smul.u32 (%p851_p4), 24, %s242_s9 }
  0x22   : > { %s246_s14 = scalar_lea.vmem (%p851_p4), %s1022_s4, %s676_s10 }
  0x23   : > { %v279_v0 = vld [vmem:[%s246_s14] sm:$0xff] (%p851_p4)  ;;  %v281_v1 = vld [vmem:[%s246_s14 + $0x18] sm:$0xff] (%p851_p4)  ;;  %v283_v2 = vld [vmem:[%s246_s14 + $0x30] sm:$0xff] (%p851_p4)  ;;  %s244_s15 = scalar_lea.vmem (%p851_p4), [#allocation4], %s703_s11 }
  0x24   : > { %280 = vst [vmem:[%s244_s15] sm:$0xff] (%p851_p4), %v279_v0  ;;  %282 = vst [vmem:[%s244_s15 + $0x8] sm:$0xff] (%p851_p4), %v281_v1 }
  0x25   : > { %284 = vst [vmem:[%s244_s15 + $0x10] sm:$0xff] %v283_v2 }
  0x26 PF: > { %293 = sbr.rel (%p862_p9) target bundleno = 364 (0x16c), region = 74 }
  0x2b   : > { %772 = dma.done.wait (%p713_p8), [#allocation3], 16  }
  0x2c   : > { %774 = vsyncadd (%p713_p8), [#allocation3], 4294967280  ;;  %s300_s16 = sand.u32 1, %s777_s18  }
  0x2d   : > { %s888_s17 = smul.u32 24, %s300_s16 }
  0x2f   : > { %s891_s20 = scalar_lea.vmem [#allocation4], %s888_s17 }
  0x30   : > { %306 = sfence }
  0x31   : > { %s680_s23 = sadd.s32 4294967295, %s836_s21  ;;  %p345_p4 = scmp.lt.s32.totalorder %s836_s21, 2  ;;  %v369_v3 = vlaneseq }
  0x32   : > { %p350_p5 = scmp.gt.s32.totalorder %s680_s23, 0  ;;  %s359_s24 = sadd.s32 1, %s836_s21 }
  0x33   : > { %s346_s26 = scalar_select %p345_p4, %s836_s21, 2  ;;  %v906_v4 = vshrl.u32 %v369_v3, 7  ;;  %v925_v12 = vand.u32 127, %v369_v3 }
  0x34   : > { %p897_p8 = scmp.lt.s32.totalorder %s359_s24, 2  ;;  %p681_p9 = scmp.lt.s32.totalorder %s680_s23, 2 }
  0x35   : > { %s351_s18 = scalar_select %p350_p5, %s680_s23, 0  ;;  %v381_v5 = vadd.s32 8, %v906_v4  ;;  %v382_v8 = vadd.s32 16, %v906_v4  ;;  %vm398_vm7 = vcmp.lt.s32.totalorder %v925_v12, 33  ;;  %vm423_vm13 = vcmp.lt.s32.totalorder %v906_v4, 1 }
  0x36   : > { %s901_s29 = sld [smem:[#allocation2]]  ;;  %s1039_s24 = smov (!%p897_p8, %s359_s24), 2  ;;  %vm433_vm14 = vcmp.lt.s32.totalorder %v906_v4, 7  ;;  %vm440_vm15 = vcmp.eq.s32.totalorder %v925_v12, 0 }
  0x37   : > { %s691_s30 = sld [smem:[#allocation2 + $0x1]]  ;;  %s692_s6 = sshll.u32 %s836_s21, 3 }
  0x38   : > { %s1041_s18 = smov (!%p681_p9, %s351_s18), 2  ;;  %s693_s7 = sadd.s32 4294967288, %s692_s6 }
  0x39   : > { %s1043_s24 = smov (!%p897_p8, %s1039_s24), 2  ;;  %v385_v6 = vstv %s693_s7  ;;  %s679_s9 = sshll.u32 %s346_s26, 3 }
  0x3a   : > { %s686_s10 = sshll.u32 %s1041_s18, 3  ;;  %s690_s11 = sshll.u32 %s1043_s24, 3  ;;  %v386_v9 = vadd.s32 %v385_v6, %v906_v4  ;;  %v387_v10 = vadd.s32 %v385_v6, %v381_v5  ;;  %v388_v11 = vadd.s32 %v385_v6, %v382_v8 }
  0x3b   : > { %s348_s14 = scalar_lea.vmem %s1019_s1, %s679_s9  ;;  %s355_s23 = scalar_lea.vmem %s1020_s2, %s686_s10 }
  0x3c   : > { %s365_s26 = scalar_lea.vmem %s1021_s3, %s690_s11  ;;  %vm389_vm0 = vcmp.ge.s32.totalorder %v386_v9, 0  ;;  %vm392_vm1 = vcmp.lt.s32.totalorder %v386_v9, 20  ;;  %vm390_vm2 = vcmp.ge.s32.totalorder %v387_v10, 0  ;;  %vm393_vm3 = vcmp.lt.s32.totalorder %v387_v10, 20  ;;  %v376_v13 = vld [vmem:[%s355_s23] sm:$0xff]  ;;  %s788_s24 = smov 1  }
  0x3d   : > { %s373_s8 = ssub.f32 %s691_s30, %s901_s29  ;;  %v377_v14 = vld [vmem:[%s348_s14] sm:$0xff]  ;;  %vm391_vm4 = vcmp.ge.s32.totalorder %v388_v11, 0  ;;  %vm394_vm5 = vcmp.lt.s32.totalorder %v388_v11, 20  ;;  %v410_v16 = vstv %s901_s29  ;;  %vm395_vm6 = vmand %vm389_vm0, %vm392_vm1  ;;  %s789_s18 = smov 127   ;;  %vm455_vm0 = vcmp.ge.s32.totalorder %v925_v12, 32 }
  0x3e   : > { %v378_v15 = vld [vmem:[%s365_s26] sm:$0xff]  ;;  %vm396_vm8 = vmand %vm390_vm2, %vm393_vm3  ;;  %v411_v17 = vsub.f32 %v376_v13, %v410_v16  ;;  %v412_v18 = vsub.f32 %v377_v14, %v410_v16  ;;  %s344_s29 = scalar_lea.vmem [#allocation5], %s888_s17  ;;  %p1034_p10 = scmp.ne.s32.totalorder %s1025_s27, 0 }
  0x3f   : > { %v374_v7 = vstv %s373_s8  ;;  %vm397_vm9 = vmand %vm391_vm4, %vm394_vm5  ;;  %v413_v19 = vsub.f32 %v378_v15, %v410_v16  ;;  %s523_s8 = scalar_lea.vmem (%p1034_p10), %s1023_s5, %s692_s6 }
  0x40   : > { %742 = vrcp.f32 %v374_v7  ;;  %vm929_vm10 = vmand %vm395_vm6, %vm398_vm7 }
  0x41   : > { %vm933_vm11 = vmand %vm396_vm8, %vm398_vm7 }
  0x42   : > { %vm937_vm12 = vmand %vm397_vm9, %vm398_vm7 }
  0x4d   : > { %v743_v22 = vpop.eup %742 }
  0x4e   : > { %v414_v24 = vmul.f32 %v743_v22, %v411_v17  ;;  %v415_v25 = vmul.f32 %v743_v22, %v412_v18  ;;  %v416_v26 = vmul.f32 %v743_v22, %v413_v19 }
  0x50   : > { %v417_v27 = vsel %vm929_vm10, %v414_v24, inf  ;;  %v418_v28 = vsel %vm933_vm11, %v415_v25, inf  ;;  %v419_v29 = vsel %vm937_vm12, %v416_v26, inf  ;;  %v496_v26 = vld [vmem:[%s891_s20] sm:$0xff] }
  0x51   : > { %v420_v30 = vrot.slane %v417_v27, 7  ;;  %v422_v31 = vrot.slane %v419_v29, 7  ;;  %v430_v32 = vrot.slane %v417_v27, 1  ;;  %v431_v33 = vrot.slane %v418_v28, 1 }
  0x52   : > { %v421_v34 = vrot.slane %v418_v28, 7  ;;  %v432_v35 = vrot.slane %v419_v29, 1 }
  0x53   : > { %v426_v36 = vsel %vm423_vm13, %v422_v31, %v420_v30  ;;  %v435_v37 = vsel %vm433_vm14, %v430_v32, %v431_v33 }
  0x54   : > { %v427_v38 = vmin.f32 %v426_v36, %v417_v27  ;;  %v424_v39 = vsel %vm423_vm13, %v421_v34, %v422_v31  ;;  %v436_v40 = vsel %vm433_vm14, %v432_v35, %v430_v32  ;;  %v425_v41 = vsel %vm423_vm13, %v420_v30, %v421_v34  ;;  %v694_v27 = vld [vmem:[%s891_s20 + $0x8] sm:$0xff] }
  0x55   : > { %v429_v42 = vmin.f32 %v424_v39, %v419_v29  ;;  %v428_v43 = vmin.f32 %v425_v41, %v418_v28  ;;  %v434_v44 = vsel %vm433_vm14, %v431_v33, %v432_v35  ;;  %v696_v28 = vld [vmem:[%s891_s20 + $0x10] sm:$0xff] }
  0x56   : > { %v437_v45 = vmin.f32 %v427_v38, %v435_v37 }
  0x57   : > { %v439_v46 = vmin.f32 %v429_v42, %v436_v40  ;;  %v438_v47 = vmin.f32 %v428_v43, %v434_v44 }
  0x58   : > { %441 = vrot.lane.b32.xlu0 %v437_v45, %s788_s24 }
  0x59   : > { %445 = vrot.lane.b32.xlu1 %v439_v46, %s788_s24 }
  0x5c   : > { %443 = vrot.lane.b32.xlu0 %v438_v47, %s788_s24 }
  0x5d   : > { %456 = vrot.lane.b32.xlu1 %v437_v45, %s789_s18 }
  0x60   : > { %458 = vrot.lane.b32.xlu0 %v438_v47, %s789_s18 }
  0x61   : > { %460 = vrot.lane.b32.xlu1 %v439_v46, %s789_s18 }
  0xca   : > { %v442_v48 = vpop.permute.xlu0 %441 }
  0xcb   : > { %v446_v49 = vpop.permute.xlu1 %445  ;;  %v449_v50 = vsel %vm440_vm15, inf, %v442_v48 }
  0xcc   : > { %v452_v52 = vmin.f32 %v449_v50, %v437_v45  ;;  %v451_v55 = vsel %vm440_vm15, inf, %v446_v49 }
  0xcd   : > { %v454_v60 = vmin.f32 %v451_v55, %v439_v46 }
  0xce   : > { %v444_v51 = vpop.permute.xlu0 %443 }
  0xcf   : > { %v450_v53 = vsel %vm440_vm15, inf, %v444_v51  ;;  %v457_v54 = vpop.permute.xlu1 %456 }
  0xd0   : > { %v464_v56 = vsel %vm455_vm0, inf, %v457_v54  ;;  %v453_v58 = vmin.f32 %v450_v53, %v438_v47 }
  0xd1   : > { %v467_v57 = vmin.f32 %v452_v52, %v464_v56 }
  0xd2   : > { %v459_v59 = vpop.permute.xlu0 %458 }
  0xd3   : > { %v465_v61 = vsel %vm455_vm0, inf, %v459_v59  ;;  %v461_v62 = vpop.permute.xlu1 %460  ;;  %v470_v63 = vsel %vm929_vm10, %v467_v57, 0.0 }
  0xd4   : > { %v468_v0 = vmin.f32 %v453_v58, %v465_v61  ;;  %v466_v1 = vsel %vm455_vm0, inf, %v461_v62  ;;  %v473_v5 = vrot.slane %v470_v63, 7 }
  0xd5   : > { %v469_v2 = vmin.f32 %v454_v60, %v466_v1 }
  0xd6   : > { %v471_v3 = vsel %vm933_vm11, %v468_v0, 0.0 }
  0xd7   : > { %v474_v6 = vrot.slane %v471_v3, 7  ;;  %v479_v7 = vrot.slane %v471_v3, 1  ;;  %v472_v8 = vsel %vm937_vm12, %v469_v2, 0.0  ;;  %v477_v11 = vmul.f32 0.45186275, %v471_v3 }
  0xd8   : > { %v480_v9 = vrot.slane %v472_v8, 1 }
  0xd9   : > { %v475_v10 = vsel %vm423_vm13, %v473_v5, %v474_v6 }
  0xda   : > { %v476_v13 = vmul.f32 0.27406862, %v475_v10  ;;  %v481_v14 = vsel %vm433_vm14, %v479_v7, %v480_v9 }
  0xdb   : > { %v482_v16 = vmul.f32 0.27406862, %v481_v14 }
  0xdc   : > { %v478_v15 = vadd.f32 %v477_v11, %v476_v13 }
  0xde   : > { %v483_v17 = vadd.f32 %v482_v16, %v478_v15 }
  0xe0   : > { %490 = vrot.lane.b32.xlu1 %v483_v17, %s789_s18  ;;  %484 = vrot.lane.b32.xlu0 %v483_v17, %s788_s24  ;;  %v488_v22 = vmul.f32 0.45186275, %v483_v17 }
 0x152   : > { %v491_v18 = vpop.permute.xlu1 %490  ;;  %v485_v19 = vpop.permute.xlu0 %484 }
 0x153   : > { %v492_v20 = vsel %vm455_vm0, 0.0, %v491_v18  ;;  %v486_v21 = vsel %vm440_vm15, 0.0, %v485_v19 }
 0x154   : > { %v487_v4 = vmul.f32 0.27406862, %v486_v21  ;;  %v493_v23 = vmul.f32 0.27406862, %v492_v20 }
 0x156   : > { %v489_v24 = vadd.f32 %v488_v22, %v487_v4 }
 0x158   : > { %v494_v25 = vadd.f32 %v493_v23, %v489_v24 }
 0x15a   : > { %v495_v29 = vmul.f32 0.7, %v494_v25 }
 0x15c   : > { %v497_v30 = vsub.f32 %v496_v26, %v495_v29  ;;  %v503_v31 = vsub.f32 %v694_v27, %v495_v29  ;;  %v510_v32 = vsub.f32 %v696_v28, %v495_v29 }
 0x15e   : > { %v498_v33 = vmax.f32 %v497_v30, 0.0  ;;  %v504_v34 = vmax.f32 %v503_v31, 0.0  ;;  %v511_v35 = vmax.f32 %v510_v32, 0.0 }
 0x15f   : > { %521 = sbr.rel (!%p1034_p10) target bundleno = 364 (0x16c), region = 86 }
 0x160   : > { %v499_v36 = vmin.f32 %v498_v33, 1.0  ;;  %v505_v37 = vmin.f32 %v504_v34, 1.0  ;;  %v512_v12 = vmin.f32 %v511_v35, 1.0 }
 0x162   : > { %500 = vst [vmem:[%s344_s29] sm:$0xff] %v499_v36  ;;  %695 = vst [vmem:[%s344_s29 + $0x8] sm:$0xff] %v505_v37 }
 0x163   : > { %697 = vst [vmem:[%s344_s29 + $0x10] sm:$0xff] %v512_v12 }
 0x169   : > { %v556_v38 = vld [vmem:[%s344_s29] sm:$0xff]  ;;  %v558_v39 = vld [vmem:[%s344_s29 + $0x8] sm:$0xff] }
 0x16a   : > { %v560_v40 = vld [vmem:[%s344_s29 + $0x10] sm:$0xff]  ;;  %557 = vst [vmem:[%s523_s8] sm:$0xff] %v556_v38  ;;  %559 = vst [vmem:[%s523_s8 + $0x18] sm:$0xff] %v558_v39 }
 0x16b   : > { %561 = vst [vmem:[%s523_s8 + $0x30] sm:$0xff] %v560_v40 }
 0x16c PF: > { %p13_p11 = scmp.ge.s32.totalorder %s839_s22, 5   ;;  %s1035_s18 = smov %s781_s19 }
 0x16d   : > { %s1036_s19 = smov %s849_s25  ;;  %s1037_s20 = smov %s839_s22 }
 0x16e   :  { %15 = sbr.rel (!%p13_p11) target bundleno = 2 (0x2), region = 169 }
 0x173   :  { %577 = vsyncpa [#allocation3], 1 }
 0x174   :  { %579 = vsyncpa [#allocation3 + $0x1], 1 }

// kernel: fast_line_darken.2
= control target key start
LH: loop header
LB: loop body
LE: loop exit
PB: predicated region body
PF: predicated region fallthrough
CT: control target
= control target key end

     0   :  { %s902_s18 = smov 0   ;;  %s904_s19 = smov 0   ;;  %s1082_s0 = inlined_call_operand.vmem [shape: f32[3,24,128], index: 0, kind: input, shape index: {}, may-alias: {0,1,2}]   ;;  %s1083_s1 = inlined_call_operand.vmem [shape: f32[3,24,128], index: 1, kind: input, shape index: {}, may-alias: {0,1,2}]   ;;  %s1084_s2 = inlined_call_operand.vmem [shape: f32[3,24,128], index: 2, kind: input, shape index: {}, may-alias: {0,1,2}]   ;;  %s1085_s3 = inlined_call_operand.vmem [shape: f32[24,128], index: 3, kind: output, shape index: {0}]   ;;  %s1086_s4 = inlined_call_operand.vmem [shape: f32[3,8,128], index: 4, kind: output, shape index: {1}]   ;;  %s1087_s5 = inlined_call_operand.vmem [shape: f32[3,8,128], index: 5, kind: output, shape index: {2}]  }
   0x1   :  { %s906_s20 = smov 0   ;;  %s908_s21 = smov 0  }
   0x2   :  { %s910_s22 = smov 0   ;;  %s912_s23 = smov 0  }
   0x3   :  { %s914_s24 = smov 0  }
   0x4 LB: > { %1089 = sst [smem:[#allocation5_spill]] %s864_s23  ;;  %s938_s25 = sadd.s32 4294967295, %s868_s24   ;;  %s868_s24 = sphi %s914_s24, %s1102_s24   ;;  %s864_s23 = sphi %s912_s23, %s1097_s23   ;;  %s860_s22 = sphi %s910_s22, %s1096_s22   ;;  %s856_s21 = sphi %s908_s21, %s1101_s21   ;;  %s852_s20 = sphi %s906_s20, %s1100_s20   ;;  %s848_s19 = sphi %s904_s19, %s1099_s19   ;;  %s844_s18 = sphi %s902_s18, %s1098_s18  }
   0x5   : > { %s941_s26 = sadd.s32 1, %s868_s24   ;;  %s23_s28 = sadd.s32 1, %s864_s23 }
   0x6   : > { %s20_s27 = ssub.s32 %s868_s24, %s941_s26  ;;  %p30_p1 = scmp.ne.s32.totalorder %s864_s23, %s860_s22 }
   0x7   : > { %p21_p0 = scmp.eq.s32.totalorder %s20_s27, 0  ;;  %p31_p2 = scmp.eq.s32.totalorder %s868_s24, 0 }
   0x8   : > { %p47_p3 = scmp.gt.s32.totalorder %s938_s25, 0  ;;  %s729_s6 = sadd.s32 4294967295, %s941_s26 }
   0x9   : > { %s951_s29 = scalar_select %p21_p0, %s864_s23, %s23_s28  }
   0xa   : > { %p955_p4 = por %p31_p2, %p30_p1  ;;  %p50_p5 = scmp.gt.s32.totalorder %s729_s6, 0 }
   0xb   : > { %1090 = sst [smem:[#allocation6_spill]] %s951_s29  ;;  %s55_s8 = sadd.s32 1, %s856_s21 }
   0xc   : > { %s961_s7 = scalar_select %p47_p3, %s938_s25, 0 }
   0xd   : > { %p62_p6 = scmp.ne.s32.totalorder %s856_s21, %s852_s20  ;;  %p79_p7 = scmp.lt.s32.totalorder %s941_s26, 2 }
   0xe   : > { %s1104_s6 = smov (!%p50_p5, %s729_s6), 0  ;;  %s81_s10 = sadd.s32 1, %s941_s26 }
   0xf   : > { %p969_p8 = por %p62_p6, %p31_p2  ;;  %s52_s11 = ssub.s32 %s961_s7, %s1104_s6 }
  0x10   : > { %p82_p9 = scmp.lt.s32.totalorder %s81_s10, 2  ;;  %p53_p10 = scmp.eq.s32.totalorder %s52_s11, 0 }
  0x11   : > { %s976_s12 = scalar_select %p79_p7, %s941_s26, 2 }
  0x12   : > { %s979_s13 = scalar_select %p53_p10, %s856_s21, %s55_s8  }
  0x13   : > { %s1106_s10 = smov (!%p82_p9, %s81_s10), 2  ;;  %p94_p11 = scmp.ne.s32.totalorder %s848_s19, %s844_s18 }
  0x14   : > { %s84_s14 = ssub.s32 %s976_s12, %s1106_s10  ;;  %s87_s15 = sadd.s32 1, %s848_s19 }
  0x15   : > { %p85_p12 = scmp.eq.s32.totalorder %s84_s14, 0  ;;  %p987_p13 = por %p94_p11, %p31_p2 }
  0x16   : > { %p731_p0 = scmp.ge.s32.totalorder %s868_s24, 3 }
  0x17   : > { %s992_s17 = scalar_select %p85_p12, %s848_s19, %s87_s15  }
  0x18   : > { %198 = sbr.rel (%p731_p0) target bundleno = 47 (0x2f), region = 16 }
  0x1d   : > { %201 = sbr.rel (!%p955_p4) target bundleno = 35 (0x23), region = 20  ;;  %s203_s27 = sand.u32 (%p955_p4), 1, %s864_s23  }
  0x1e   : > { %s732_s28 = sshll.u32 (%p955_p4), %s868_s24, 3  ;;  %s744_s6 = smul.u32 (%p955_p4), 24, %s203_s27 }
  0x1f   : > { %s207_s11 = scalar_lea.vmem (%p955_p4), %s1082_s0, %s732_s28 }
  0x20   : > { %v240_v0 = vld [vmem:[%s207_s11] sm:$0xff] (%p955_p4)  ;;  %v242_v1 = vld [vmem:[%s207_s11 + $0x18] sm:$0xff] (%p955_p4)  ;;  %v244_v2 = vld [vmem:[%s207_s11 + $0x30] sm:$0xff] (%p955_p4)  ;;  %s205_s14 = scalar_lea.vmem (%p955_p4), [#allocation2], %s744_s6 }
  0x21   : > { %241 = vst [vmem:[%s205_s14] sm:$0xff] (%p955_p4), %v240_v0  ;;  %243 = vst [vmem:[%s205_s14 + $0x8] sm:$0xff] (%p955_p4), %v242_v1 }
  0x22   : > { %245 = vst [vmem:[%s205_s14 + $0x10] sm:$0xff] %v244_v2 }
  0x23 PF: > { %251 = sbr.rel (!%p969_p8) target bundleno = 41 (0x29), region = 58  ;;  %s253_s30 = sand.u32 (%p969_p8), 1, %s856_s21  }
  0x24   : > { %s734_s15 = sshll.u32 (%p969_p8), %s961_s7, 3  ;;  %s745_s27 = smul.u32 (%p969_p8), 24, %s253_s30 }
  0x25   : > { %s260_s28 = scalar_lea.vmem (%p969_p8), %s1083_s1, %s734_s15 }
  0x26   : > { %v293_v3 = vld [vmem:[%s260_s28] sm:$0xff] (%p969_p8)  ;;  %v295_v4 = vld [vmem:[%s260_s28 + $0x18] sm:$0xff] (%p969_p8)  ;;  %v297_v5 = vld [vmem:[%s260_s28 + $0x30] sm:$0xff] (%p969_p8)  ;;  %s255_s6 = scalar_lea.vmem (%p969_p8), [#allocation3], %s745_s27 }
  0x27   : > { %294 = vst [vmem:[%s255_s6] sm:$0xff] (%p969_p8), %v293_v3  ;;  %296 = vst [vmem:[%s255_s6 + $0x8] sm:$0xff] (%p969_p8), %v295_v4 }
  0x28   : > { %298 = vst [vmem:[%s255_s6 + $0x10] sm:$0xff] %v297_v5 }
  0x29 PF: > { %304 = sbr.rel (!%p987_p13) target bundleno = 47 (0x2f), region = 96  ;;  %s306_s9 = sand.u32 (%p987_p13), 1, %s848_s19  }
  0x2a   : > { %s735_s7 = sshll.u32 (%p987_p13), %s976_s12, 3  ;;  %s746_s8 = smul.u32 (%p987_p13), 24, %s306_s9 }
  0x2b   : > { %s313_s23 = scalar_lea.vmem (%p987_p13), %s1084_s2, %s735_s7 }
  0x2c   : > { %v346_v6 = vld [vmem:[%s313_s23] sm:$0xff] (%p987_p13)  ;;  %v348_v7 = vld [vmem:[%s313_s23 + $0x18] sm:$0xff] (%p987_p13)  ;;  %v350_v8 = vld [vmem:[%s313_s23 + $0x30] sm:$0xff] (%p987_p13)  ;;  %s308_s29 = scalar_lea.vmem (%p987_p13), [#allocation4], %s746_s8 }
  0x2d   : > { %347 = vst [vmem:[%s308_s29] sm:$0xff] (%p987_p13), %v346_v6  ;;  %349 = vst [vmem:[%s308_s29 + $0x8] sm:$0xff] (%p987_p13), %v348_v7 }
  0x2e   : > { %351 = vst [vmem:[%s308_s29 + $0x10] sm:$0xff] %v350_v8 }
  0x2f PF: > { %p736_p1 = scmp.ge.s32.totalorder %s868_s24, 1  ;;  %p356_p2 = scmp.lt.s32.totalorder %s868_s24, 4 }
  0x31   : > { %p357_p3 = pnand %p736_p1, %p356_p2 }
  0x32   : > { %s363_s12 = sand.u32 (!%p357_p3), 1, %s860_s22   ;;  %s370_s16 = sand.u32 (!%p357_p3), 1, %s852_s20  }
  0x33   : > { %360 = sbr.rel (%p357_p3) target bundleno = 422 (0x1a6), region = 134  ;;  %s377_s30 = sand.u32 (!%p357_p3), 1, %s844_s18  }
  0x34   : > { %s747_s14 = smul.u32 (!%p357_p3), 24, %s363_s12  ;;  %s740_s27 = sshll.u32 (!%p357_p3), %s938_s25, 3 }
  0x35   : > { %s748_s15 = smul.u32 (!%p357_p3), 24, %s370_s16  ;;  %s741_s20 = sadd.s32 (!%p357_p3), 4294967288, %s740_s27 }
  0x36   : > { %s749_s28 = smul.u32 (!%p357_p3), 24, %s377_s30  ;;  %s365_s6 = scalar_lea.vmem (!%p357_p3), [#allocation2], %s747_s14 }
  0x37   : > { %s372_s24 = scalar_lea.vmem (!%p357_p3), [#allocation3], %s748_s15  ;;  %s870_s22 = smov (!%p357_p3), 1  }
  0x38   : > { %v437_v9 = vlaneseq  ;;  %v447_v11 = vld [vmem:[%s365_s6] sm:$0xff]  ;;  %v448_v12 = vld [vmem:[%s365_s6 + $0x8] sm:$0xff]  ;;  %v449_v13 = vld [vmem:[%s365_s6 + $0x10] sm:$0xff]  ;;  %s379_s18 = scalar_lea.vmem [#allocation4], %s749_s28  ;;  %v469_v33 = vstv %s741_s20  ;;  %s871_s9 = smov 127  }
  0x39   : > { %v439_v16 = vld [vmem:[%s372_s24] sm:$0xff]  ;;  %v440_v17 = vld [vmem:[%s372_s24 + $0x8] sm:$0xff]  ;;  %v441_v18 = vld [vmem:[%s372_s24 + $0x10] sm:$0xff]  ;;  %v450_v19 = vmul.f32 0.2989, %v447_v11  ;;  %v536_v54 = vstv %s740_s27  ;;  %p425_p4 = scmp.lt.s32.totalorder %s938_s25, 2 }
  0x3a   : > { %v1022_v10 = vshrl.u32 %v437_v9, 7  ;;  %v442_v20 = vmul.f32 0.2989, %v439_v16  ;;  %v443_v21 = vmul.f32 0.587, %v440_v17  ;;  %v455_v25 = vld [vmem:[%s379_s18] sm:$0xff] }
  0x3b   : > { %v445_v22 = vmul.f32 0.114, %v441_v18  ;;  %v451_v23 = vmul.f32 0.587, %v448_v12  ;;  %v453_v24 = vmul.f32 0.114, %v449_v13 }
  0x3c   : > { %v465_v14 = vadd.s32 8, %v1022_v10  ;;  %v466_v15 = vadd.s32 16, %v1022_v10  ;;  %v456_v26 = vld [vmem:[%s379_s18 + $0x8] sm:$0xff]  ;;  %v444_v27 = vadd.f32 %v443_v21, %v442_v20  ;;  %v457_v28 = vld [vmem:[%s379_s18 + $0x10] sm:$0xff]  ;;  %v458_v29 = vmul.f32 0.2989, %v455_v25 }
  0x3d   : > { %v459_v30 = vmul.f32 0.587, %v456_v26  ;;  %v452_v31 = vadd.f32 %v451_v23, %v450_v19  ;;  %v461_v32 = vmul.f32 0.114, %v457_v28  ;;  %v470_v36 = vadd.s32 %v469_v33, %v1022_v10  ;;  %s1108_s25 = smov (!%p425_p4, %s938_s25), 2 }
  0x3e   : > { %v446_v34 = vadd.f32 %v445_v22, %v444_v27  ;;  %v471_v37 = vadd.s32 %v469_v33, %v465_v14  ;;  %v472_v39 = vadd.s32 %v469_v33, %v466_v15  ;;  %vm493_vm9 = vcmp.lt.s32.totalorder %v1022_v10, 1  ;;  %s1042_s7 = sshll.u32 %s1108_s25, 3 }
  0x3f   : > { %v460_v35 = vadd.f32 %v459_v30, %v458_v29  ;;  %v454_v38 = vadd.f32 %v453_v24, %v452_v31  ;;  %vm473_vm0 = vcmp.ge.s32.totalorder %v470_v36, 0  ;;  %vm476_vm2 = vcmp.lt.s32.totalorder %v470_v36, 20  ;;  %s428_s11 = scalar_lea.vmem %s1085_s3, %s1042_s7  ;;  %s432_s29 = scalar_lea.vmem %s1086_s4, %s1042_s7 }
  0x40   : > { %vm474_vm1 = vcmp.ge.s32.totalorder %v471_v37, 0  ;;  %vm475_vm3 = vcmp.ge.s32.totalorder %v472_v39, 0  ;;  %vm477_vm4 = vcmp.lt.s32.totalorder %v471_v37, 20  ;;  %vm478_vm5 = vcmp.lt.s32.totalorder %v472_v39, 20  ;;  %vm479_vm6 = vmand %vm473_vm0, %vm476_vm2  ;;  %s436_s30 = scalar_lea.vmem %s1087_s5, %s1042_s7 }
  0x41   : > { %v462_v40 = vadd.f32 %v461_v32, %v460_v35  ;;  %vm480_vm7 = vmand %vm474_vm1, %vm477_vm4  ;;  %v488_v41 = vsel %vm479_vm6, %v446_v34, 0.0  ;;  %vm497_vm10 = vcmp.lt.s32.totalorder %v1022_v10, 7  ;;  %v438_v55 = vand.u32 127, %v437_v9 }
  0x42   : > { %vm481_vm8 = vmand %vm475_vm3, %vm478_vm5  ;;  %v489_v42 = vsel %vm480_vm7, %v454_v38, 0.0  ;;  %v491_v43 = vrot.slane %v488_v41, 7  ;;  %v537_v56 = vadd.s32 %v536_v54, %v1022_v10 }
  0x43   : > { %v490_v44 = vsel %vm481_vm8, %v462_v40, 0.0  ;;  %v492_v45 = vrot.slane %v489_v42, 7  ;;  %v495_v46 = vrot.slane %v489_v42, 1  ;;  %v499_v47 = vmul.f32 2.0, %v489_v42 }
  0x44   : > { %v496_v48 = vrot.slane %v490_v44, 1  ;;  %vm538_vm11 = vcmp.lt.s32.totalorder %v537_v56, 20  ;;  %vm539_vm12 = vcmp.lt.s32.totalorder %v438_v55, 33  ;;  %vm509_vm14 = vcmp.eq.s32.totalorder %v438_v55, 0 }
  0x45   : > { %v494_v49 = vsel %vm493_vm9, %v491_v43, %v492_v45  ;;  %vm1036_vm13 = vmand %vm538_vm11, %vm539_vm12  ;;  %vm503_vm15 = vcmp.ge.s32.totalorder %v438_v55, 32 }
  0x46   : > { %v498_v50 = vsel %vm497_vm10, %v495_v46, %v496_v48  ;;  %v500_v51 = vadd.f32 %v499_v47, %v494_v49 }
  0x47   : > { %v502_v52 = vsub.f32 %v498_v50, %v494_v49 }
  0x48   : > { %v501_v53 = vadd.f32 %v500_v51, %v498_v50 }
  0x49   : > { %516 = vrot.lane.b32.xlu0 %v502_v52, %s870_s22  ;;  %v519_v58 = vmul.f32 2.0, %v502_v52 }
  0x4a   : > { %510 = vrot.lane.b32.xlu1 %v501_v53, %s870_s22 }
  0x4d   : > { %504 = vrot.lane.b32.xlu0 %v501_v53, %s871_s9 }
  0x4e   : > { %521 = vrot.lane.b32.xlu1 %v502_v52, %s871_s9 }
  0xbb   : > { %v517_v59 = vpop.permute.xlu0 %516 }
  0xbc   : > { %v518_v60 = vsel %vm509_vm14, 0.0, %v517_v59  ;;  %v511_v61 = vpop.permute.xlu1 %510 }
  0xbd   : > { %v520_v62 = vadd.f32 %v519_v58, %v518_v60  ;;  %v514_v0 = vsel %vm509_vm14, 0.0, %v511_v61 }
  0xbf   : > { %v505_v63 = vpop.permute.xlu0 %504 }
  0xc0   : > { %v508_v1 = vsel %vm503_vm15, 0.0, %v505_v63  ;;  %v522_v2 = vpop.permute.xlu1 %521 }
  0xc1   : > { %v515_v3 = vsub.f32 %v508_v1, %v514_v0  ;;  %v523_v4 = vsel %vm503_vm15, 0.0, %v522_v2 }
  0xc2   : > { %v524_v5 = vadd.f32 %v523_v4, %v520_v62 }
  0xc3   : > { %v525_v6 = vmul.f32 %v515_v3, %v515_v3 }
  0xc4   : > { %v526_v7 = vmul.f32 %v524_v5, %v524_v5 }
  0xc6   : > { %v527_v8 = vadd.f32 %v526_v7, %v525_v6 }
  0xc8   : > { %812 = vrsqrt.f32 %v527_v8  ;;  %vm530_vm0 = vcmp.eq.f32.partialorder %v527_v8, inf  ;;  %v533_v11 = vand.u32 2147483648, %v527_v8  ;;  %vm532_vm1 = vcmp.eq.f32.partialorder %v527_v8, 0.0 }
  0xd5   : > { %v813_v9 = vpop.eup %812 }
  0xd6   : > { %v529_v10 = vmul.f32 %v813_v9, %v527_v8 }
  0xd8   : > { %v531_v12 = vsel %vm530_vm0, %v527_v8, %v529_v10 }
  0xd9   : > { %v534_v13 = vsel %vm532_vm1, %v533_v11, %v531_v12 }
  0xda   : > { %v555_v14 = vsel %vm1036_vm13, %v534_v13, -inf  ;;  %v545_v15 = vsel %vm1036_vm13, %v534_v13, inf  ;;  %535 = vst [vmem:[%s428_s11] sm:$0xff] %v534_v13 }
  0xdb   : > { %v556_v16 = vrot.slane %v555_v14, 4  ;;  %v546_v17 = vrot.slane %v545_v15, 4 }
  0xdd   : > { %v557_v18 = vmax.f32 %v555_v14, %v556_v16  ;;  %v547_v19 = vmin.f32 %v545_v15, %v546_v17 }
  0xdf   : > { %v558_v20 = vrot.slane %v557_v18, 2  ;;  %v548_v21 = vrot.slane %v547_v19, 2 }
  0xe1   : > { %v559_v22 = vmax.f32 %v557_v18, %v558_v20  ;;  %v549_v23 = vmin.f32 %v547_v19, %v548_v21 }
  0xe3   : > { %v560_v24 = vrot.slane %v559_v22, 1  ;;  %v550_v25 = vrot.slane %v549_v23, 1 }
  0xe5   : > { %v561_v26 = vmax.f32 %v559_v22, %v560_v24  ;;  %v551_v27 = vmin.f32 %v549_v23, %v550_v25 }
  0xe7   : > { %562 = vmax.xlane.f32.xlu1 %v561_v26  ;;  %552 = vmin.xlane.f32.xlu0 %v551_v27 }
 0x170   : > { %v563_v28 = vpop.xlane.xlu1 %562  ;;  %v553_v29 = vpop.xlane.xlu0 %552 }
 0x171   : > { %750 = vpush %v553_v29 }
 0x172   : > { %752 = vpush %v563_v28 }
 0x1a2   : > { %s751_s12 = spop %750 }
 0x1a3   : > { %v565_v30 = vstv %s751_s12  ;;  %s753_s15 = spop %752 }
 0x1a4   : > { %566 = vst [vmem:[%s432_s29] sm:$0xff] %v565_v30  ;;  %v567_v31 = vstv %s753_s15 }
 0x1a5   : > { %568 = vst [vmem:[%s436_s30] sm:$0xff] %v567_v31 }
 0x1a6 PF: > { %s1096_s22 = sld [smem:[#allocation5_spill]]  ;;  %p13_p5 = scmp.ge.s32.totalorder %s941_s26, 5  }
 0x1a7   : > { %s1097_s23 = sld [smem:[#allocation6_spill]]  ;;  %s1098_s18 = smov %s848_s19 }
 0x1a8   : > { %s1099_s19 = smov %s992_s17  ;;  %s1100_s20 = smov %s856_s21 }
 0x1a9   : > { %s1101_s21 = smov %s979_s13  ;;  %s1102_s24 = smov %s941_s26 }
 0x1aa   :  { %15 = sbr.rel (!%p13_p5) target bundleno = 4 (0x4), region = 221 }

</bundles_post_ra>
